<compile_context>
chip_gen: v7x
topology: tpu7x:2x2x1
jax: 0.10.0
libtpu: 0.0.40
codegen_flags: <defaults>
</compile_context>

<pallas_src>
from typing import NamedTuple

import jax
import jax.numpy as jnp
from jax import lax
from jax.experimental import pallas as pl
from jax.experimental.pallas import tpu as pltpu


_LANE = 128      # lane width; mode-block sizes are multiples of this
_TSUB = 128      # in-kernel mode sub-tile (keeps the live accumulator in vregs)
_TM_MAX = 2048   # hard cap on modes per grid step (per-step scheduling sanity)


def _round_up(x, n):
    return ((x + n - 1) // n) * n


def _cdiv(a, b):
    return (a + b - 1) // b


def _chunks(total, size):
    """Static (offset, length) chunks covering [0, total)."""
    out, off = [], 0
    while off < total:
        s = min(size, total - off)
        out.append((off, s))
        off += s
    return out


def _vmem_capacity_bytes():
    try:
        info = pltpu.get_tpu_info()
        for name in ("vmem_capacity_bytes", "vmem_bytes", "vmem_capacity"):
            v = getattr(info, name, None)
            if isinstance(v, int) and v > 0:
                return v
    except Exception:
        pass
    return 64 * 1024 * 1024   # conservative (v7x per-TC VMEM); safe everywhere


class SpectralPlan(NamedTuple):
    B: int
    Cin: int
    Cout: int
    modes1: int
    modes2: int
    TM: int           # modes (lanes) per grid step
    Mp: int           # padded total modes (= TM * n_m)
    cout_blk: int     # Cout per grid step
    Cop: int          # padded Cout (= cout_blk * n_co)
    n_m: int
    n_co: int
    vmem_limit_bytes: int


def plan_spectral_tiles(B, Cin, Cout, modes1, modes2):
    """Derive mode/Cout tiling from a per-generation VMEM budget."""
    M = 2 * modes1 * modes2

    # Cout blocking: 8-16 sublanes per step -> parallel grid steps + small tiles.
    if Cout <= 8:
        cb = Cout
    elif Cout >= 32 and Cout % 16 == 0:
        cb = 16
    else:
        cb = 8
    n_co = _cdiv(Cout, cb)
    Cop = cb * n_co

    # Per-lane bytes of one double-buffered grid step (f32, re+im), using the
    # VMEM-padded (sublane->8) second-minor extents.
    per_lane = 16 * (Cin * _round_up(B, 8)        # x blocks
                     + Cin * _round_up(cb, 8)     # w blocks
                     + B * _round_up(cb, 8))      # out blocks
    cap = _vmem_capacity_bytes()
    budget = int(0.6 * cap)
    tm_cap = max(_LANE, min(_TM_MAX, (budget // per_lane) // _LANE * _LANE))

    # Pad modes to 128 first, then pick TM dividing the padded extent so lane
    # padding waste stays bounded (instead of rounding M up to a full TM).
    Mp0 = _round_up(M, _LANE)
    n_m = _cdiv(Mp0, tm_cap)
    TM = _round_up(_cdiv(Mp0, n_m), _LANE)
    Mp = TM * n_m

    step_bytes = per_lane * TM
    vmem_limit = int(min(cap, max(2 * step_bytes + (2 << 20), 32 << 20)))

    return SpectralPlan(B=B, Cin=Cin, Cout=Cout, modes1=modes1, modes2=modes2,
                        TM=TM, Mp=Mp, cout_blk=cb, Cop=Cop, n_m=n_m, n_co=n_co,
                        vmem_limit_bytes=vmem_limit)


def pack_spectral_weights(w1r, w1i, w2r, w2i, plan):
    """Pack + pad the two corner weights ONCE (they are static parameters).

    Returns wr, wi of shape (Cin, Cop, Mp), mode axis minor (lane-dense).
    """
    Cin, Cout, m1, m2 = w1r.shape
    mm = m1 * m2

    def pack(a, b):
        w = jnp.concatenate([a.reshape(Cin, Cout, mm),
                             b.reshape(Cin, Cout, mm)], axis=-1)
        w = w.astype(jnp.float32)
        return jnp.pad(w, ((0, 0),
                           (0, plan.Cop - Cout),
                           (0, plan.Mp - 2 * mm)))

    return pack(w1r, w2r), pack(w1i, w2i)


def _spectral_modes_kernel(xr_ref, xi_ref, wr_ref, wi_ref, or_ref, oi_ref):
    """Lane-dense complex channel contraction for one (mode, cout) block.

    Block shapes (mode axis minor -> lanes):
      xr/xi : (Cin, B,  TM)   -- channel-major: xr_ref[i] is a contiguous slab
      wr/wi : (Cin, CO, TM)
      or/oi : (B,   CO, TM)
    Computes out[b,o,m] = sum_i x[i,b,m] * w[i,o,m] (complex) on the VPU,
    tile-by-tile so the live accumulator stays in vregs.
    """
    Cin, B, TM = xr_ref.shape
    CO = wr_ref.shape[1]

    unroll = True if Cin <= 16 else 4

    for m0, ms in _chunks(TM, _TSUB):          # 128-lane mode sub-tiles
        for c0, cs in _chunks(CO, 8):          # 8-sublane Cout sub-tiles
            for b0, bs in _chunks(B, 8):       # 8 batch rows at a time

                def body(i, carry, b0=b0, bs=bs, c0=c0, cs=cs, m0=m0, ms=ms):
                    acc_r, acc_i = carry
                    xr_i = xr_ref[i, pl.ds(b0, bs), pl.ds(m0, ms)][:, None, :]
                    xi_i = xi_ref[i, pl.ds(b0, bs), pl.ds(m0, ms)][:, None, :]
                    wr_i = wr_ref[i, pl.ds(c0, cs), pl.ds(m0, ms)][None, :, :]
                    wi_i = wi_ref[i, pl.ds(c0, cs), pl.ds(m0, ms)][None, :, :]
                    acc_r = acc_r + (xr_i * wr_i - xi_i * wi_i)
                    acc_i = acc_i + (xr_i * wi_i + xi_i * wr_i)
                    return acc_r, acc_i

                init = (jnp.zeros((bs, cs, ms), jnp.float32),
                        jnp.zeros((bs, cs, ms), jnp.float32))
                acc_r, acc_i = lax.fori_loop(0, Cin, body, init, unroll=unroll)
                or_ref[pl.ds(b0, bs), pl.ds(c0, cs), pl.ds(m0, ms)] = acc_r
                oi_ref[pl.ds(b0, bs), pl.ds(c0, cs), pl.ds(m0, ms)] = acc_i


def spectral_mode_matmul(xr, xi, wr, wi, plan):
    """Complex per-mode channel contraction.

    xr, xi : (Cin, B,  Mp)  float32  (channel-major, mode axis on lanes)
    wr, wi : (Cin, Cop, Mp) float32
    returns (out_r, out_i), each (B, Cop, Mp) float32
    """
    Cin, B, Mp = xr.shape
    Cop = wr.shape[1]
    TM, cb = plan.TM, plan.cout_blk
    n_m, n_co = plan.n_m, plan.n_co

    # co is the inner grid axis, so the x block index (0,0,m) is unchanged
    # across consecutive steps and its DMA is skipped by the pipeline.
    x_spec = pl.BlockSpec((Cin, B, TM), lambda m, co: (0, 0, m))
    w_spec = pl.BlockSpec((Cin, cb, TM), lambda m, co: (0, co, m))
    o_spec = pl.BlockSpec((B, cb, TM), lambda m, co: (0, co, m))

    flops = 8 * B * Cin * Cop * Mp                       # complex MAC = 8 flops
    bytes_accessed = 4 * Mp * (2 * B * Cin + 2 * Cin * Cop + 2 * B * Cop)

    out_r, out_i = pl.pallas_call(
        _spectral_modes_kernel,
        out_shape=(
            jax.ShapeDtypeStruct((B, Cop, Mp), jnp.float32),
            jax.ShapeDtypeStruct((B, Cop, Mp), jnp.float32),
        ),
        grid_spec=pltpu.PrefetchScalarGridSpec(
            num_scalar_prefetch=0,
            grid=(n_m, n_co),
            in_specs=[x_spec, x_spec, w_spec, w_spec],
            out_specs=[o_spec, o_spec],
        ),
        compiler_params=pltpu.CompilerParams(
            dimension_semantics=("parallel", "parallel"),
            vmem_limit_bytes=plan.vmem_limit_bytes,
        ),
        cost_estimate=pl.CostEstimate(
            flops=flops, transcendentals=0, bytes_accessed=bytes_accessed),
    )(xr, xi, wr, wi)
    return out_r, out_i


def spectral_conv2d(x, wr_packed, wi_packed, plan):
    """Forward pass of SpectralConv2d. x: (B, Cin, H, W) float32 (NCHW).

    wr_packed/wi_packed come from pack_spectral_weights (done once).
    """
    B, Cin, H, W = x.shape
    Cout, m1, m2 = plan.Cout, plan.modes1, plan.modes2
    mm = m1 * m2

    # TODO(synk): rfft2/irfft2 have no Pallas primitive; they stay as XLA ops.
    x_ft = jnp.fft.rfft2(x, norm="ortho")               # (B, Cin, H, W//2+1) c64

    lo = x_ft[:, :, :m1, :m2].reshape(B, Cin, mm)       # low-frequency rows
    hi = x_ft[:, :, H - m1:, :m2].reshape(B, Cin, mm)   # high (negative) rows
    # Channel-major so the kernel reads contiguous (B, TM) slabs per channel.
    lo = jnp.transpose(lo, (1, 0, 2))                   # (Cin, B, mm)
    hi = jnp.transpose(hi, (1, 0, 2))

    pad = plan.Mp - 2 * mm
    parts_r = [jnp.real(lo).astype(jnp.float32), jnp.real(hi).astype(jnp.float32)]
    parts_i = [jnp.imag(lo).astype(jnp.float32), jnp.imag(hi).astype(jnp.float32)]
    if pad:
        zpad = jnp.zeros((Cin, B, pad), jnp.float32)
        parts_r.append(zpad)
        parts_i.append(zpad)
    xr = jnp.concatenate(parts_r, axis=-1)              # (Cin, B, Mp)
    xi = jnp.concatenate(parts_i, axis=-1)

    out_r, out_i = spectral_mode_matmul(xr, xi, wr_packed, wi_packed, plan)

    out_c = (out_r[:, :Cout, :2 * mm]
             + 1j * out_i[:, :Cout, :2 * mm]).astype(jnp.complex64)

    Wf = W // 2 + 1
    out_ft = jnp.zeros((B, Cout, H, Wf), dtype=jnp.complex64)
    out_ft = out_ft.at[:, :, :m1, :m2].set(
        out_c[:, :, :mm].reshape(B, Cout, m1, m2))
    out_ft = out_ft.at[:, :, H - m1:, :m2].set(
        out_c[:, :, mm:].reshape(B, Cout, m1, m2))
    return jnp.fft.irfft2(out_ft, s=(H, W), norm="ortho")


def _reference(x, w1r, w1i, w2r, w2i, modes1, modes2):
    """Pure-JAX reference mirroring the PyTorch forward exactly."""
    B, Cin, H, W = x.shape
    Cout = w1r.shape[1]
    w1 = (w1r + 1j * w1i).astype(jnp.complex64)
    w2 = (w2r + 1j * w2i).astype(jnp.complex64)
    x_ft = jnp.fft.rfft2(x, norm="ortho")
    out_ft = jnp.zeros((B, Cout, H, W // 2 + 1), dtype=jnp.complex64)
    out_ft = out_ft.at[:, :, :modes1, :modes2].set(
        jnp.einsum("bixy,ioxy->boxy", x_ft[:, :, :modes1, :modes2], w1))
    out_ft = out_ft.at[:, :, H - modes1:, :modes2].set(
        jnp.einsum("bixy,ioxy->boxy", x_ft[:, :, H - modes1:, :modes2], w2))
    return jnp.fft.irfft2(out_ft, s=(H, W), norm="ortho")


if __name__ == "__main__":
    B, Cin, Cout = 2, 4, 4
    H = W = 16
    modes1 = modes2 = 4

    key = jax.random.PRNGKey(0)
    kx, k1r, k1i, k2r, k2i = jax.random.split(key, 5)

    x = jax.random.normal(kx, (B, Cin, H, W), dtype=jnp.float32)

    # Deterministic init mirroring: scale * torch.rand(..., dtype=cfloat)
    scale = 1.0 / (Cin * Cout)
    w1r = scale * jax.random.uniform(k1r, (Cin, Cout, modes1, modes2), dtype=jnp.float32)
    w1i = scale * jax.random.uniform(k1i, (Cin, Cout, modes1, modes2), dtype=jnp.float32)
    w2r = scale * jax.random.uniform(k2r, (Cin, Cout, modes1, modes2), dtype=jnp.float32)
    w2i = scale * jax.random.uniform(k2i, (Cin, Cout, modes1, modes2), dtype=jnp.float32)

    # Plan tiling once, pack/pad weights once (static parameters).
    plan = plan_spectral_tiles(B, Cin, Cout, modes1, modes2)
    wr_packed, wi_packed = pack_spectral_weights(w1r, w1i, w2r, w2i, plan)
    wr_packed = jax.block_until_ready(wr_packed)
    wi_packed = jax.block_until_ready(wi_packed)

    y = spectral_conv2d(x, wr_packed, wi_packed, plan)
    y = jax.block_until_ready(y)

    y_ref = jax.block_until_ready(_reference(x, w1r, w1i, w2r, w2i, modes1, modes2))
    assert y.shape == (B, Cout, H, W)
    assert jnp.allclose(y, y_ref, atol=1e-5, rtol=1e-5), "mismatch vs reference"

    print("KERNEL_OK")
</pallas_src>

<mosaic_0001>
module attributes {stable_mosaic.version = 11 : i64} {
  func.func @_spectral_modes_kernel(%arg0: i32, %arg1: i32, %arg2: memref<4x2x128xf32, #tpu.memory_space<vmem>>, %arg3: memref<4x2x128xf32, #tpu.memory_space<vmem>>, %arg4: memref<4x4x128xf32, #tpu.memory_space<vmem>>, %arg5: memref<4x4x128xf32, #tpu.memory_space<vmem>>, %arg6: memref<2x4x128xf32, #tpu.memory_space<vmem>>, %arg7: memref<2x4x128xf32, #tpu.memory_space<vmem>>) attributes {dimension_semantics = [#tpu.dimension_semantics<parallel>, #tpu.dimension_semantics<parallel>], iteration_bounds = array<i64: 1, 1>, scalar_prefetch = 0 : i64, scratch_operands = 0 : i64, tpu.core_type = #tpu.core_type<tc>, window_params = [{transform_indices = @transform_0, window_bounds = array<i64: 4, 2, 128>}, {transform_indices = @transform_1, window_bounds = array<i64: 4, 2, 128>}, {transform_indices = @transform_2, window_bounds = array<i64: 4, 4, 128>}, {transform_indices = @transform_3, window_bounds = array<i64: 4, 4, 128>}, {transform_indices = @transform_4, window_bounds = array<i64: 2, 4, 128>}, {transform_indices = @transform_5, window_bounds = array<i64: 2, 4, 128>}]} {
    %cst = arith.constant 0.000000e+00 : f32
    %0 = vector.broadcast %cst : f32 to vector<2x4x128xf32>
    %cst_0 = arith.constant 0.000000e+00 : f32
    %1 = vector.broadcast %cst_0 : f32 to vector<2x4x128xf32>
    %c0_i32 = arith.constant 0 : i32
    %2 = arith.index_cast %c0_i32 : i32 to index
    %c0 = arith.constant 0 : index
    %c0_1 = arith.constant 0 : index
    %3 = vector.load %arg2[%2, %c0, %c0_1] : memref<4x2x128xf32, #tpu.memory_space<vmem>>, vector<1x2x128xf32>
    %4 = vector.shape_cast %3 : vector<1x2x128xf32> to vector<2x128xf32>
    %5 = vector.shape_cast %4 : vector<2x128xf32> to vector<2x1x128xf32>
    %6 = arith.index_cast %c0_i32 : i32 to index
    %c0_2 = arith.constant 0 : index
    %c0_3 = arith.constant 0 : index
    %7 = vector.load %arg3[%6, %c0_2, %c0_3] : memref<4x2x128xf32, #tpu.memory_space<vmem>>, vector<1x2x128xf32>
    %8 = vector.shape_cast %7 : vector<1x2x128xf32> to vector<2x128xf32>
    %9 = vector.shape_cast %8 : vector<2x128xf32> to vector<2x1x128xf32>
    %10 = arith.index_cast %c0_i32 : i32 to index
    %c0_4 = arith.constant 0 : index
    %c0_5 = arith.constant 0 : index
    %11 = vector.load %arg4[%10, %c0_4, %c0_5] : memref<4x4x128xf32, #tpu.memory_space<vmem>>, vector<1x4x128xf32>
    %12 = vector.shape_cast %11 : vector<1x4x128xf32> to vector<4x128xf32>
    %13 = vector.shape_cast %12 : vector<4x128xf32> to vector<1x4x128xf32>
    %14 = arith.index_cast %c0_i32 : i32 to index
    %c0_6 = arith.constant 0 : index
    %c0_7 = arith.constant 0 : index
    %15 = vector.load %arg5[%14, %c0_6, %c0_7] : memref<4x4x128xf32, #tpu.memory_space<vmem>>, vector<1x4x128xf32>
    %16 = vector.shape_cast %15 : vector<1x4x128xf32> to vector<4x128xf32>
    %17 = vector.shape_cast %16 : vector<4x128xf32> to vector<1x4x128xf32>
    %18 = vector.broadcast %5 : vector<2x1x128xf32> to vector<2x4x128xf32>
    %19 = vector.broadcast %13 : vector<1x4x128xf32> to vector<2x4x128xf32>
    %20 = arith.mulf %18, %19 : vector<2x4x128xf32>
    %21 = vector.broadcast %9 : vector<2x1x128xf32> to vector<2x4x128xf32>
    %22 = vector.broadcast %17 : vector<1x4x128xf32> to vector<2x4x128xf32>
    %23 = arith.mulf %21, %22 : vector<2x4x128xf32>
    %24 = arith.subf %20, %23 : vector<2x4x128xf32>
    %25 = arith.addf %0, %24 : vector<2x4x128xf32>
    %26 = vector.broadcast %5 : vector<2x1x128xf32> to vector<2x4x128xf32>
    %27 = vector.broadcast %17 : vector<1x4x128xf32> to vector<2x4x128xf32>
    %28 = arith.mulf %26, %27 : vector<2x4x128xf32>
    %29 = vector.broadcast %9 : vector<2x1x128xf32> to vector<2x4x128xf32>
    %30 = vector.broadcast %13 : vector<1x4x128xf32> to vector<2x4x128xf32>
    %31 = arith.mulf %29, %30 : vector<2x4x128xf32>
    %32 = arith.addf %28, %31 : vector<2x4x128xf32>
    %33 = arith.addf %1, %32 : vector<2x4x128xf32>
    %c1_i32 = arith.constant 1 : i32
    %34 = arith.index_cast %c1_i32 : i32 to index
    %c0_8 = arith.constant 0 : index
    %c0_9 = arith.constant 0 : index
    %35 = vector.load %arg2[%34, %c0_8, %c0_9] : memref<4x2x128xf32, #tpu.memory_space<vmem>>, vector<1x2x128xf32>
    %36 = vector.shape_cast %35 : vector<1x2x128xf32> to vector<2x128xf32>
    %37 = vector.shape_cast %36 : vector<2x128xf32> to vector<2x1x128xf32>
    %38 = arith.index_cast %c1_i32 : i32 to index
    %c0_10 = arith.constant 0 : index
    %c0_11 = arith.constant 0 : index
    %39 = vector.load %arg3[%38, %c0_10, %c0_11] : memref<4x2x128xf32, #tpu.memory_space<vmem>>, vector<1x2x128xf32>
    %40 = vector.shape_cast %39 : vector<1x2x128xf32> to vector<2x128xf32>
    %41 = vector.shape_cast %40 : vector<2x128xf32> to vector<2x1x128xf32>
    %42 = arith.index_cast %c1_i32 : i32 to index
    %c0_12 = arith.constant 0 : index
    %c0_13 = arith.constant 0 : index
    %43 = vector.load %arg4[%42, %c0_12, %c0_13] : memref<4x4x128xf32, #tpu.memory_space<vmem>>, vector<1x4x128xf32>
    %44 = vector.shape_cast %43 : vector<1x4x128xf32> to vector<4x128xf32>
    %45 = vector.shape_cast %44 : vector<4x128xf32> to vector<1x4x128xf32>
    %46 = arith.index_cast %c1_i32 : i32 to index
    %c0_14 = arith.constant 0 : index
    %c0_15 = arith.constant 0 : index
    %47 = vector.load %arg5[%46, %c0_14, %c0_15] : memref<4x4x128xf32, #tpu.memory_space<vmem>>, vector<1x4x128xf32>
    %48 = vector.shape_cast %47 : vector<1x4x128xf32> to vector<4x128xf32>
    %49 = vector.shape_cast %48 : vector<4x128xf32> to vector<1x4x128xf32>
    %50 = vector.broadcast %37 : vector<2x1x128xf32> to vector<2x4x128xf32>
    %51 = vector.broadcast %45 : vector<1x4x128xf32> to vector<2x4x128xf32>
    %52 = arith.mulf %50, %51 : vector<2x4x128xf32>
    %53 = vector.broadcast %41 : vector<2x1x128xf32> to vector<2x4x128xf32>
    %54 = vector.broadcast %49 : vector<1x4x128xf32> to vector<2x4x128xf32>
    %55 = arith.mulf %53, %54 : vector<2x4x128xf32>
    %56 = arith.subf %52, %55 : vector<2x4x128xf32>
    %57 = arith.addf %25, %56 : vector<2x4x128xf32>
    %58 = vector.broadcast %37 : vector<2x1x128xf32> to vector<2x4x128xf32>
    %59 = vector.broadcast %49 : vector<1x4x128xf32> to vector<2x4x128xf32>
    %60 = arith.mulf %58, %59 : vector<2x4x128xf32>
    %61 = vector.broadcast %41 : vector<2x1x128xf32> to vector<2x4x128xf32>
    %62 = vector.broadcast %45 : vector<1x4x128xf32> to vector<2x4x128xf32>
    %63 = arith.mulf %61, %62 : vector<2x4x128xf32>
    %64 = arith.addf %60, %63 : vector<2x4x128xf32>
    %65 = arith.addf %33, %64 : vector<2x4x128xf32>
    %c2_i32 = arith.constant 2 : i32
    %66 = arith.index_cast %c2_i32 : i32 to index
    %c0_16 = arith.constant 0 : index
    %c0_17 = arith.constant 0 : index
    %67 = vector.load %arg2[%66, %c0_16, %c0_17] : memref<4x2x128xf32, #tpu.memory_space<vmem>>, vector<1x2x128xf32>
    %68 = vector.shape_cast %67 : vector<1x2x128xf32> to vector<2x128xf32>
    %69 = vector.shape_cast %68 : vector<2x128xf32> to vector<2x1x128xf32>
    %70 = arith.index_cast %c2_i32 : i32 to index
    %c0_18 = arith.constant 0 : index
    %c0_19 = arith.constant 0 : index
    %71 = vector.load %arg3[%70, %c0_18, %c0_19] : memref<4x2x128xf32, #tpu.memory_space<vmem>>, vector<1x2x128xf32>
    %72 = vector.shape_cast %71 : vector<1x2x128xf32> to vector<2x128xf32>
    %73 = vector.shape_cast %72 : vector<2x128xf32> to vector<2x1x128xf32>
    %74 = arith.index_cast %c2_i32 : i32 to index
    %c0_20 = arith.constant 0 : index
    %c0_21 = arith.constant 0 : index
    %75 = vector.load %arg4[%74, %c0_20, %c0_21] : memref<4x4x128xf32, #tpu.memory_space<vmem>>, vector<1x4x128xf32>
    %76 = vector.shape_cast %75 : vector<1x4x128xf32> to vector<4x128xf32>
    %77 = vector.shape_cast %76 : vector<4x128xf32> to vector<1x4x128xf32>
    %78 = arith.index_cast %c2_i32 : i32 to index
    %c0_22 = arith.constant 0 : index
    %c0_23 = arith.constant 0 : index
    %79 = vector.load %arg5[%78, %c0_22, %c0_23] : memref<4x4x128xf32, #tpu.memory_space<vmem>>, vector<1x4x128xf32>
    %80 = vector.shape_cast %79 : vector<1x4x128xf32> to vector<4x128xf32>
    %81 = vector.shape_cast %80 : vector<4x128xf32> to vector<1x4x128xf32>
    %82 = vector.broadcast %69 : vector<2x1x128xf32> to vector<2x4x128xf32>
    %83 = vector.broadcast %77 : vector<1x4x128xf32> to vector<2x4x128xf32>
    %84 = arith.mulf %82, %83 : vector<2x4x128xf32>
    %85 = vector.broadcast %73 : vector<2x1x128xf32> to vector<2x4x128xf32>
    %86 = vector.broadcast %81 : vector<1x4x128xf32> to vector<2x4x128xf32>
    %87 = arith.mulf %85, %86 : vector<2x4x128xf32>
    %88 = arith.subf %84, %87 : vector<2x4x128xf32>
    %89 = arith.addf %57, %88 : vector<2x4x128xf32>
    %90 = vector.broadcast %69 : vector<2x1x128xf32> to vector<2x4x128xf32>
    %91 = vector.broadcast %81 : vector<1x4x128xf32> to vector<2x4x128xf32>
    %92 = arith.mulf %90, %91 : vector<2x4x128xf32>
    %93 = vector.broadcast %73 : vector<2x1x128xf32> to vector<2x4x128xf32>
    %94 = vector.broadcast %77 : vector<1x4x128xf32> to vector<2x4x128xf32>
    %95 = arith.mulf %93, %94 : vector<2x4x128xf32>
    %96 = arith.addf %92, %95 : vector<2x4x128xf32>
    %97 = arith.addf %65, %96 : vector<2x4x128xf32>
    %c3_i32 = arith.constant 3 : i32
    %98 = arith.index_cast %c3_i32 : i32 to index
    %c0_24 = arith.constant 0 : index
    %c0_25 = arith.constant 0 : index
    %99 = vector.load %arg2[%98, %c0_24, %c0_25] : memref<4x2x128xf32, #tpu.memory_space<vmem>>, vector<1x2x128xf32>
    %100 = vector.shape_cast %99 : vector<1x2x128xf32> to vector<2x128xf32>
    %101 = vector.shape_cast %100 : vector<2x128xf32> to vector<2x1x128xf32>
    %102 = arith.index_cast %c3_i32 : i32 to index
    %c0_26 = arith.constant 0 : index
    %c0_27 = arith.constant 0 : index
    %103 = vector.load %arg3[%102, %c0_26, %c0_27] : memref<4x2x128xf32, #tpu.memory_space<vmem>>, vector<1x2x128xf32>
    %104 = vector.shape_cast %103 : vector<1x2x128xf32> to vector<2x128xf32>
    %105 = vector.shape_cast %104 : vector<2x128xf32> to vector<2x1x128xf32>
    %106 = arith.index_cast %c3_i32 : i32 to index
    %c0_28 = arith.constant 0 : index
    %c0_29 = arith.constant 0 : index
    %107 = vector.load %arg4[%106, %c0_28, %c0_29] : memref<4x4x128xf32, #tpu.memory_space<vmem>>, vector<1x4x128xf32>
    %108 = vector.shape_cast %107 : vector<1x4x128xf32> to vector<4x128xf32>
    %109 = vector.shape_cast %108 : vector<4x128xf32> to vector<1x4x128xf32>
    %110 = arith.index_cast %c3_i32 : i32 to index
    %c0_30 = arith.constant 0 : index
    %c0_31 = arith.constant 0 : index
    %111 = vector.load %arg5[%110, %c0_30, %c0_31] : memref<4x4x128xf32, #tpu.memory_space<vmem>>, vector<1x4x128xf32>
    %112 = vector.shape_cast %111 : vector<1x4x128xf32> to vector<4x128xf32>
    %113 = vector.shape_cast %112 : vector<4x128xf32> to vector<1x4x128xf32>
    %114 = vector.broadcast %101 : vector<2x1x128xf32> to vector<2x4x128xf32>
    %115 = vector.broadcast %109 : vector<1x4x128xf32> to vector<2x4x128xf32>
    %116 = arith.mulf %114, %115 : vector<2x4x128xf32>
    %117 = vector.broadcast %105 : vector<2x1x128xf32> to vector<2x4x128xf32>
    %118 = vector.broadcast %113 : vector<1x4x128xf32> to vector<2x4x128xf32>
    %119 = arith.mulf %117, %118 : vector<2x4x128xf32>
    %120 = arith.subf %116, %119 : vector<2x4x128xf32>
    %121 = arith.addf %89, %120 : vector<2x4x128xf32>
    %122 = vector.broadcast %101 : vector<2x1x128xf32> to vector<2x4x128xf32>
    %123 = vector.broadcast %113 : vector<1x4x128xf32> to vector<2x4x128xf32>
    %124 = arith.mulf %122, %123 : vector<2x4x128xf32>
    %125 = vector.broadcast %105 : vector<2x1x128xf32> to vector<2x4x128xf32>
    %126 = vector.broadcast %109 : vector<1x4x128xf32> to vector<2x4x128xf32>
    %127 = arith.mulf %125, %126 : vector<2x4x128xf32>
    %128 = arith.addf %124, %127 : vector<2x4x128xf32>
    %129 = arith.addf %97, %128 : vector<2x4x128xf32>
    %c4_i32 = arith.constant 4 : i32
    %c0_32 = arith.constant 0 : index
    %c0_33 = arith.constant 0 : index
    %c0_34 = arith.constant 0 : index
    %130 = vector.load %arg6[%c0_32, %c0_33, %c0_34] : memref<2x4x128xf32, #tpu.memory_space<vmem>>, vector<2x4x128xf32>
    tpu.vector_store %arg6[%c0_32, %c0_33, %c0_34], %121 {strides = array<i32>} : memref<2x4x128xf32, #tpu.memory_space<vmem>>, vector<2x4x128xf32>,
    %c0_35 = arith.constant 0 : index
    %c0_36 = arith.constant 0 : index
    %c0_37 = arith.constant 0 : index
    %131 = vector.load %arg7[%c0_35, %c0_36, %c0_37] : memref<2x4x128xf32, #tpu.memory_space<vmem>>, vector<2x4x128xf32>
    tpu.vector_store %arg7[%c0_35, %c0_36, %c0_37], %129 {strides = array<i32>} : memref<2x4x128xf32, #tpu.memory_space<vmem>>, vector<2x4x128xf32>,
    return
  }
  func.func @transform_0(%arg0: i32, %arg1: i32) -> (i32, i32, i32) {
    %c0_i32 = arith.constant 0 : i32
    %c0_i32_0 = arith.constant 0 : i32
    %c0_i32_1 = arith.constant 0 : i32
    return %c0_i32, %c0_i32_0, %arg0 : i32, i32, i32
  }
  func.func @transform_1(%arg0: i32, %arg1: i32) -> (i32, i32, i32) {
    %c0_i32 = arith.constant 0 : i32
    %c0_i32_0 = arith.constant 0 : i32
    %c0_i32_1 = arith.constant 0 : i32
    return %c0_i32, %c0_i32_0, %arg0 : i32, i32, i32
  }
  func.func @transform_2(%arg0: i32, %arg1: i32) -> (i32, i32, i32) {
    %c0_i32 = arith.constant 0 : i32
    %c0_i32_0 = arith.constant 0 : i32
    return %c0_i32, %arg1, %arg0 : i32, i32, i32
  }
  func.func @transform_3(%arg0: i32, %arg1: i32) -> (i32, i32, i32) {
    %c0_i32 = arith.constant 0 : i32
    %c0_i32_0 = arith.constant 0 : i32
    return %c0_i32, %arg1, %arg0 : i32, i32, i32
  }
  func.func @transform_4(%arg0: i32, %arg1: i32) -> (i32, i32, i32) {
    %c0_i32 = arith.constant 0 : i32
    %c0_i32_0 = arith.constant 0 : i32
    return %c0_i32, %arg1, %arg0 : i32, i32, i32
  }
  func.func @transform_5(%arg0: i32, %arg1: i32) -> (i32, i32, i32) {
    %c0_i32 = arith.constant 0 : i32
    %c0_i32_0 = arith.constant 0 : i32
    return %c0_i32, %arg1, %arg0 : i32, i32, i32
  }
}

</mosaic_0001>

<bundles_post_ra>
// kernel: tpu_custom_call.1
= control target key start
LH: loop header
LB: loop body
LE: loop exit
PB: predicated region body
PF: predicated region fallthrough
CT: control target
= control target key end

     0   :  { %11 = vsyncpa [#allocation3], 0  ;;  %s856_s0 = inlined_call_operand.hbm [shape: f32[4,2,128], index: 0, kind: input, shape index: {}]   ;;  %s857_s1 = inlined_call_operand.hbm [shape: f32[4,2,128], index: 1, kind: input, shape index: {}]   ;;  %s858_s2 = inlined_call_operand.hbm [shape: f32[4,4,128], index: 2, kind: input, shape index: {}]   ;;  %s859_s3 = inlined_call_operand.hbm [shape: f32[4,4,128], index: 3, kind: input, shape index: {}]   ;;  %s860_s4 = inlined_call_operand.hbm [shape: f32[2,4,128], index: 4, kind: output, shape index: {0}]   ;;  %s861_s5 = inlined_call_operand.hbm [shape: f32[2,4,128], index: 5, kind: output, shape index: {1}]  }
   0x1   :  { %12 = vsyncpa [#allocation6], 0 }
   0x2   :  { %13 = vsyncpa [#allocation9], 0 }
   0x3   :  { %14 = vsyncpa [#allocation4], 0 }
   0x4   :  { %15 = vsyncpa [#allocation12], 0  ;;  %s632_s18 = smov [#allocation5]   ;;  %s633_s20 = smov [#allocation2]  }
   0x5   :  { %s33_s19 = sshll.u32 %s632_s18, 4  ;;  %s21_s21 = sshll.u32 %s633_s20, 4  ;;  %s34_s19 = int_to_ptr.vmem [resolvable:$true] %s33_s19  ;;  %s673_s21 = int_to_ptr.vmem [resolvable:$true] %s21_s21 }
   0x6   :  { %s490_s24 = scalar_lea.hbm %s857_s1, 128 }
   0x7   :  { %p491_p0 = scmp.ne.s32.totalorder %s857_s1, %s490_s24  ;;  %p494_p1 = scmp.lt.u32.totalorder %s490_s24, %s857_s1 }
   0x9   :  { %p496_p2 = pnand %p494_p1, %p491_p0 }
   0xb   :  { %499 = shalt.err (!%p496_p2)
}
   0xc   :  { %s500_s29 = scalar_lea.vmem %s34_s19, 128  ;;  %p505_p4 = scmp.lt.s32.totalorder %s34_s19, %s34_s19 }
   0xd   :  { %p501_p3 = scmp.ne.s32.totalorder %s34_s19, %s500_s29  ;;  %p506_p5 = scmp.lt.s32.totalorder %s500_s29, %s500_s29 }
   0xf   :  { %p507_p6 = por %p506_p5, %p505_p4 }
  0x11   :  { %p508_p7 = pnand %p507_p6, %p501_p3 }
  0x13   :  { %511 = shalt.err (!%p508_p7)
}
  0x14   :  { %s634_s30 = smov 32   ;;  %s635_s6 = smov 2  }
  0x15   :  { %39 = dma.hbm_to_vmem [thread:$0]  %s857_s1, 128, %s34_s19, [#allocation6], %s634_s30, %s634_s30, %s635_s6  }
  0x16   :  { %s512_s11 = scalar_lea.hbm %s856_s0, 128 }
  0x17   :  { %p513_p8 = scmp.ne.s32.totalorder %s856_s0, %s512_s11  ;;  %p516_p9 = scmp.lt.u32.totalorder %s512_s11, %s856_s0 }
  0x19   :  { %p518_p10 = pnand %p516_p9, %p513_p8 }
  0x1b   :  { %521 = shalt.err (!%p518_p10)
}
  0x1c   :  { %s522_s16 = scalar_lea.vmem %s673_s21, 128  ;;  %p527_p12 = scmp.lt.s32.totalorder %s673_s21, %s673_s21 }
  0x1d   :  { %p523_p11 = scmp.ne.s32.totalorder %s673_s21, %s522_s16  ;;  %p528_p13 = scmp.lt.s32.totalorder %s522_s16, %s522_s16 }
  0x1f   :  { %p529_p0 = por %p528_p13, %p527_p12 }
  0x21   :  { %p530_p1 = pnand %p529_p0, %p523_p11 }
  0x23   :  { %533 = shalt.err (!%p530_p1)
}
  0x24   :  { %27 = dma.hbm_to_vmem [thread:$0]  %s856_s0, 128, %s673_s21, [#allocation3], %s634_s30, %s634_s30, %s635_s6  }
  0x25   :  { %s636_s18 = smov [#allocation7]   ;;  %s534_s23 = scalar_lea.hbm %s858_s2, 256 }
  0x26   :  { %s45_s19 = sshll.u32 %s636_s18, 4  ;;  %p535_p2 = scmp.ne.s32.totalorder %s858_s2, %s534_s23  ;;  %s46_s19 = int_to_ptr.vmem [resolvable:$true] %s45_s19 }
  0x27   :  { %p538_p3 = scmp.lt.u32.totalorder %s534_s23, %s858_s2 }
  0x29   :  { %p540_p4 = pnand %p538_p3, %p535_p2 }
  0x2b   :  { %543 = shalt.err (!%p540_p4)
}
  0x2c   :  { %s544_s28 = scalar_lea.vmem %s46_s19, 256  ;;  %p549_p6 = scmp.lt.s32.totalorder %s46_s19, %s46_s19 }
  0x2d   :  { %p545_p5 = scmp.ne.s32.totalorder %s46_s19, %s544_s28  ;;  %p550_p7 = scmp.lt.s32.totalorder %s544_s28, %s544_s28 }
  0x2f   :  { %p551_p8 = por %p550_p7, %p549_p6 }
  0x31   :  { %p552_p9 = pnand %p551_p8, %p545_p5 }
  0x33   :  { %555 = shalt.err (!%p552_p9)
}
  0x34   :  { %s637_s0 = smov 64   ;;  %s638_s21 = smov 4  }
  0x35   :  { %51 = dma.hbm_to_vmem [thread:$0]  %s858_s2, 256, %s46_s19, [#allocation6], %s637_s0, %s637_s0, %s638_s21  }
  0x36   :  { %s639_s6 = smov [#allocation8]   ;;  %s556_s10 = scalar_lea.hbm %s859_s3, 256 }
  0x37   :  { %s57_s7 = sshll.u32 %s639_s6, 4  ;;  %p557_p10 = scmp.ne.s32.totalorder %s859_s3, %s556_s10  ;;  %s58_s7 = int_to_ptr.vmem [resolvable:$true] %s57_s7 }
  0x38   :  { %p560_p11 = scmp.lt.u32.totalorder %s556_s10, %s859_s3 }
  0x3a   :  { %p562_p12 = pnand %p560_p11, %p557_p10 }
  0x3c   :  { %565 = shalt.err (!%p562_p12)
}
  0x3d   :  { %s566_s15 = scalar_lea.vmem %s58_s7, 256  ;;  %p571_p0 = scmp.lt.s32.totalorder %s58_s7, %s58_s7 }
  0x3e   :  { %p567_p13 = scmp.ne.s32.totalorder %s58_s7, %s566_s15  ;;  %p572_p1 = scmp.lt.s32.totalorder %s566_s15, %s566_s15 }
  0x40   :  { %p573_p2 = por %p572_p1, %p571_p0 }
  0x42   :  { %p574_p3 = pnand %p573_p2, %p567_p13 }
  0x44   :  { %577 = shalt.err (!%p574_p3)
}
  0x45   :  { %63 = dma.hbm_to_vmem [thread:$0]  %s859_s3, 256, %s58_s7, [#allocation9], %s637_s0, %s637_s0, %s638_s21  }
  0x46   :  { %622 = dma.done.wait [#allocation3], 128  }
  0x47   :  { %623 = vsyncadd [#allocation3], 4294967168 }
  0x48   :  { %624 = dma.done.wait [#allocation6], 384  }
  0x49   :  { %625 = vsyncadd [#allocation6], 4294966912 }
  0x4a   :  { %626 = dma.done.wait [#allocation9], 256  }
  0x4b   :  { %627 = vsyncadd [#allocation9], 4294967040  ;;  %v89_v0 = vlaneseq  ;;  %v640_v1 = vmov 1966171168   ;;  %v740_v12 = vld [vmem:[#allocation7] sm:$0xf] }
  0x4c   :  { %v87_v2 = vunpack.c.l.s4 %v640_v1  ;;  %v471_v7 = vld.sshfl [vmem:[#allocation2] sm:$0x11 pattern:$0x75316420]  ;;  %v749_v23 = vld [vmem:[#allocation7 + $0x4] sm:$0xf] }
  0x4d   :  { %v90_v3 = vshrl.u32 %v89_v0, 7  ;;  %v472_v9 = vld.sshfl [vmem:[#allocation5] sm:$0x11 pattern:$0x75316420]  ;;  %v85_v10 = vcombine.high %v471_v7, %v471_v7  ;;  %s641_s3 = smov [#allocation10]  }
  0x4e   :  { %v88_v4 = vunpack.c.0.s8 %v87_v2  ;;  %v473_v13 = vld.sshfl [vmem:[#allocation2 + $0x2] sm:$0x11 pattern:$0x75316420]  ;;  %v109_v14 = vcombine.high %v472_v9, %v472_v9  ;;  %v753_v28 = vld [vmem:[#allocation8 + $0x4] sm:$0xf] }
  0x4f   :  { %v736_v6 = vsub.s32 0, %v90_v3  ;;  %v742_v15 = vld [vmem:[#allocation8] sm:$0xf]  ;;  %v172_v20 = vcombine.high %v473_v13, %v473_v13  ;;  %v763_v36 = vld [vmem:[#allocation7 + $0x8] sm:$0xf]  ;;  %s441_s1 = sshll.u32 %s641_s3, 4  ;;  %s442_s1 = int_to_ptr.vmem [resolvable:$true] %s441_s1 }
  0x50   :  { %v734_v5 = vsub.s32 %v88_v4, %v90_v3  ;;  %v474_v18 = vld.sshfl [vmem:[#allocation5 + $0x2] sm:$0x11 pattern:$0x75316420]  ;;  %v778_v49 = vld [vmem:[#allocation7 + $0xc] sm:$0xf]  ;;  %p583_p5 = scmp.lt.s32.totalorder %s442_s1, %s442_s1 }
  0x51   :  { %v475_v24 = vld.sshfl [vmem:[#allocation2 + $0x4] sm:$0x11 pattern:$0x75316420]  ;;  %v197_v26 = vcombine.high %v474_v18, %v474_v18  ;;  %v769_v40 = vld [vmem:[#allocation8 + $0x8] sm:$0xf] }
  0x52   :  { %v92_v8 = vrot.slane %v471_v7, %v734_v5  ;;  %v116_v11 = vrot.slane %v472_v9, %v734_v5  ;;  %v179_v17 = vrot.slane %v473_v13, %v734_v5  ;;  %v99_v19 = vrot.slane %v85_v10, %v734_v5  ;;  %v476_v31 = vld.sshfl [vmem:[#allocation5 + $0x4] sm:$0x11 pattern:$0x75316420]  ;;  %s642_s17 = smov [#allocation11]   ;;  %s578_s19 = scalar_lea.vmem %s442_s1, 128 }
  0x53   :  { %v204_v22 = vrot.slane %v474_v18, %v734_v5  ;;  %v123_v25 = vrot.slane %v109_v14, %v734_v5  ;;  %v269_v30 = vrot.slane %v475_v24, %v734_v5  ;;  %v294_v35 = vrot.slane %v476_v31, %v734_v5  ;;  %v477_v37 = vld.sshfl [vmem:[#allocation2 + $0x6] sm:$0x11 pattern:$0x75316420]  ;;  %v781_v51 = vld [vmem:[#allocation8 + $0xc] sm:$0xf]  ;;  %p579_p4 = scmp.ne.s32.totalorder %s442_s1, %s578_s19  ;;  %p584_p6 = scmp.lt.s32.totalorder %s578_s19, %s578_s19 }
  0x54   :  { %v129_v16 = vrot.slane %v92_v8, %v736_v6  ;;  %v141_v21 = vrot.slane %v116_v11, %v736_v6  ;;  %v219_v29 = vrot.slane %v179_v17, %v736_v6  ;;  %v758_v32 = vrot.slane %v99_v19, %v736_v6  ;;  %v478_v43 = vld.sshfl [vmem:[#allocation5 + $0x6] sm:$0x11 pattern:$0x75316420]  ;;  %s453_s18 = sshll.u32 %s642_s17, 4  ;;  %s454_s18 = int_to_ptr.vmem [resolvable:$true] %s453_s18 }
  0x55   :  { %v231_v34 = vrot.slane %v204_v22, %v736_v6  ;;  %v766_v38 = vrot.slane %v123_v25, %v736_v6  ;;  %v309_v41 = vrot.slane %v269_v30, %v736_v6  ;;  %v359_v42 = vrot.slane %v477_v37, %v734_v5  ;;  %p585_p7 = por %p584_p6, %p583_p5 }
  0x56   :  { %v136_v27 = vmul.f32 %v129_v16, %v740_v12  ;;  %v148_v33 = vmul.f32 %v141_v21, %v742_v15  ;;  %v226_v39 = vmul.f32 %v219_v29, %v749_v23  ;;  %v137_v44 = vmul.f32 %v758_v32, %v740_v12 }
  0x57   :  { %v238_v46 = vmul.f32 %v231_v34, %v753_v28  ;;  %v321_v47 = vrot.slane %v294_v35, %v736_v6  ;;  %v384_v48 = vrot.slane %v478_v43, %v734_v5  ;;  %v316_v50 = vmul.f32 %v309_v41, %v763_v36  ;;  %p586_p8 = pnand %p585_p7, %p579_p4 }
  0x58   :  { %v150_v45 = vsub.f32 %v136_v27, %v148_v33  ;;  %v399_v52 = vrot.slane %v359_v42, %v736_v6  ;;  %v149_v53 = vmul.f32 %v766_v38, %v742_v15  ;;  %v186_v54 = vrot.slane %v172_v20, %v734_v5 }
  0x59   :  { %v240_v55 = vsub.f32 %v226_v39, %v238_v46  ;;  %v328_v56 = vmul.f32 %v321_v47, %v769_v40  ;;  %v411_v57 = vrot.slane %v384_v48, %v736_v6  ;;  %v211_v58 = vrot.slane %v197_v26, %v734_v5 }
  0x5a   :  { %v406_v59 = vmul.f32 %v399_v52, %v778_v49  ;;  %v151_v60 = vsub.f32 %v137_v44, %v149_v53  ;;  %v223_v61 = vrot.slane %v186_v54, %v736_v6  ;;  %v262_v62 = vcombine.high %v475_v24, %v475_v24 }
  0x5b   :  { %v242_v63 = vadd.f32 %v240_v55, %v150_v45  ;;  %v330_v0 = vsub.f32 %v316_v50, %v328_v56  ;;  %v418_v1 = vmul.f32 %v411_v57, %v781_v51  ;;  %v235_v2 = vrot.slane %v211_v58, %v736_v6 }
  0x5c   :  { %v227_v3 = vmul.f32 %v223_v61, %v749_v23  ;;  %v276_v4 = vrot.slane %v262_v62, %v734_v5  ;;  %v287_v7 = vcombine.high %v476_v31, %v476_v31  ;;  %v352_v8 = vcombine.high %v477_v37, %v477_v37 }
  0x5d   :  { %v332_v9 = vadd.f32 %v330_v0, %v242_v63  ;;  %v420_v10 = vsub.f32 %v406_v59, %v418_v1  ;;  %v239_v11 = vmul.f32 %v235_v2, %v753_v28  ;;  %v377_v13 = vcombine.high %v478_v43, %v478_v43 }
  0x5e   :  { %v301_v14 = vrot.slane %v287_v7, %v734_v5  ;;  %v313_v17 = vrot.slane %v276_v4, %v736_v6  ;;  %v366_v18 = vrot.slane %v352_v8, %v734_v5  ;;  %v154_v19 = vmul.f32 %v129_v16, %v742_v15 }
  0x5f   :  { %v422_v20 = vadd.f32 %v420_v10, %v332_v9  ;;  %v241_v22 = vsub.f32 %v227_v3, %v239_v11  ;;  %v391_v24 = vrot.slane %v377_v13, %v734_v5  ;;  %v156_v25 = vmul.f32 %v141_v21, %v740_v12 }
  0x60   :  { %v317_v26 = vmul.f32 %v313_v17, %v763_v36  ;;  %v325_v27 = vrot.slane %v301_v14, %v736_v6  ;;  %v403_v30 = vrot.slane %v366_v18, %v736_v6  ;;  %v244_v31 = vmul.f32 %v219_v29, %v753_v28 }
  0x61   :  { %432 = vst [vmem:[#allocation10] sm:$0xf] %v422_v20  ;;  %v243_v33 = vadd.f32 %v241_v22, %v151_v60  ;;  %v415_v35 = vrot.slane %v391_v24, %v736_v6  ;;  %v158_v37 = vadd.f32 %v156_v25, %v154_v19  ;;  %v246_v16 = vmul.f32 %v231_v34, %v749_v23 }
  0x62   :  { %v329_v39 = vmul.f32 %v325_v27, %v769_v40  ;;  %v407_v5 = vmul.f32 %v403_v30, %v778_v49  ;;  %v334_v21 = vmul.f32 %v309_v41, %v769_v40  ;;  %v336_v42 = vmul.f32 %v321_v47, %v763_v36 }
  0x63   :  { %v419_v43 = vmul.f32 %v415_v35, %v781_v51  ;;  %v248_v44 = vadd.f32 %v246_v16, %v244_v31  ;;  %v424_v29 = vmul.f32 %v399_v52, %v781_v51  ;;  %v426_v45 = vmul.f32 %v411_v57, %v778_v49 }
  0x64   :  { %v331_v46 = vsub.f32 %v317_v26, %v329_v39  ;;  %v338_v6 = vadd.f32 %v336_v42, %v334_v21  ;;  %v155_v34 = vmul.f32 %v758_v32, %v742_v15  ;;  %v157_v48 = vmul.f32 %v766_v38, %v740_v12 }
  0x65   :  { %v421_v50 = vsub.f32 %v407_v5, %v419_v43  ;;  %v250_v53 = vadd.f32 %v248_v44, %v158_v37  ;;  %v428_v41 = vadd.f32 %v426_v45, %v424_v29  ;;  %v245_v47 = vmul.f32 %v223_v61, %v753_v28 }
  0x66   :  { %v333_v54 = vadd.f32 %v331_v46, %v243_v33  ;;  %v159_v55 = vadd.f32 %v157_v48, %v155_v34  ;;  %v247_v52 = vmul.f32 %v235_v2, %v749_v23  ;;  %v335_v56 = vmul.f32 %v313_v17, %v769_v40 }
  0x67   :  { %v340_v57 = vadd.f32 %v338_v6, %v250_v53  ;;  %v337_v58 = vmul.f32 %v325_v27, %v763_v36  ;;  %v425_v15 = vmul.f32 %v403_v30, %v781_v51  ;;  %v427_v12 = vmul.f32 %v415_v35, %v778_v49 }
  0x68   :  { %v423_v32 = vadd.f32 %v421_v50, %v333_v54  ;;  %v249_v38 = vadd.f32 %v247_v52, %v245_v47 }
  0x69   :  { %v430_v59 = vadd.f32 %v428_v41, %v340_v57  ;;  %v339_v28 = vadd.f32 %v337_v58, %v335_v56  ;;  %v429_v61 = vadd.f32 %v427_v12, %v425_v15 }
  0x6a   :  { %433 = vst [vmem:[#allocation10 + $0x4] sm:$0xf] %v423_v32  ;;  %v251_v60 = vadd.f32 %v249_v38, %v159_v55 }
  0x6b   :  { %434 = vst [vmem:[#allocation11] sm:$0xf] %v430_v59 }
  0x6c   :  { %589 = shalt.err (!%p586_p8)
}
  0x6d   :  { %s590_s23 = scalar_lea.hbm %s860_s4, 128 }
  0x6e   :  { %p591_p9 = scmp.ne.s32.totalorder %s860_s4, %s590_s23  ;;  %p594_p10 = scmp.lt.u32.totalorder %s590_s23, %s860_s4 }
  0x70   :  { %p596_p11 = pnand %p594_p10, %p591_p9 }
  0x72   :  { %599 = shalt.err (!%p596_p11)
}
  0x73   :  { %447 = dma.vmem_to_hbm [thread:$0]  %s442_s1, 128, %s860_s4, [#allocation4], %s637_s0, %s637_s0, %s638_s21   ;;  %v341_v23 = vadd.f32 %v339_v28, %v251_v60 }
  0x74   :  { %s600_s30 = scalar_lea.vmem %s454_s18, 128  ;;  %p605_p13 = scmp.lt.s32.totalorder %s454_s18, %s454_s18 }
  0x75   :  { %v431_v36 = vadd.f32 %v429_v61, %v341_v23  ;;  %p601_p12 = scmp.ne.s32.totalorder %s454_s18, %s600_s30  ;;  %p606_p0 = scmp.lt.s32.totalorder %s600_s30, %s600_s30 }
  0x77   :  { %435 = vst [vmem:[#allocation11 + $0x4] sm:$0xf] %v431_v36  ;;  %p607_p1 = por %p606_p0, %p605_p13 }
  0x79   :  { %p608_p2 = pnand %p607_p1, %p601_p12 }
  0x7b   :  { %611 = shalt.err (!%p608_p2)
}
  0x7c   :  { %s612_s8 = scalar_lea.hbm %s861_s5, 128 }
  0x7d   :  { %p613_p3 = scmp.ne.s32.totalorder %s861_s5, %s612_s8  ;;  %p616_p4 = scmp.lt.u32.totalorder %s612_s8, %s861_s5 }
  0x7f   :  { %p618_p5 = pnand %p616_p4, %p613_p3 }
  0x81   :  { %621 = shalt.err (!%p618_p5)
}
  0x82   :  { %459 = dma.vmem_to_hbm [thread:$0]  %s454_s18, 128, %s861_s5, [#allocation12], %s637_s0, %s637_s0, %s638_s21  }
  0x83   :  { %628 = dma.done.wait [#allocation4], 128  }
  0x84   :  { %629 = vsyncadd [#allocation4], 4294967168 }
  0x85   :  { %630 = dma.done.wait [#allocation12], 128  }
  0x86   :  { %631 = vsyncadd [#allocation12], 4294967168 }
  0x87   :  { %466 = vsyncpa [#allocation3], 1 }
  0x88   :  { %467 = vsyncpa [#allocation6], 1 }
  0x89   :  { %468 = vsyncpa [#allocation9], 1 }
  0x8a   :  { %469 = vsyncpa [#allocation4], 1 }
  0x8b   :  { %470 = vsyncpa [#allocation12], 1 }

</bundles_post_ra>
